<compile_context>
chip_gen: v7x
topology: tpu7x:2x2x1
jax: 0.10.0
libtpu: 0.0.40
codegen_flags: <defaults>
</compile_context>

<pallas_src>
import functools

import jax
import jax.numpy as jnp
from jax.experimental import pallas as pl
from jax.experimental.pallas import tpu as pltpu

EPS = 1e-6


def _int_pow(x, n):
    """x**n for a static positive integer n via exponentiation-by-squaring (VPU only)."""
    result = None
    base = x
    while n > 0:
        if n & 1:
            result = base if result is None else result * base
        n >>= 1
        if n:
            base = base * base
    return result


def gem_text_kernel(p_ref, x_ref, mask_ref, invden_ref, o_ref, acc_ref, *, static_p):
    # p_ref:      SMEM (2,) float32  -> [p, 1/p]
    # x_ref:      VMEM (TB, TS, TH)  input tile (f32 or bf16)
    # mask_ref:   VMEM (TB, TS)      float32 mask**p tile
    # invden_ref: VMEM (TB, 1)       float32 1 / clip(sum(mask, dim=1), eps)
    # o_ref:      VMEM (TB, TH)      float32 output tile
    # acc_ref:    VMEM (TB, TH)      float32 accumulator, resident across the S axis
    s_idx = pl.program_id(2)

    @pl.when(s_idx == 0)
    def _():
        acc_ref[...] = jnp.zeros_like(acc_ref)

    x = x_ref[...].astype(jnp.float32)            # (TB, TS, TH)
    xc = jnp.maximum(x, EPS)                      # clamp(x, eps) > 0
    if static_p is None:
        powed = jnp.power(xc, p_ref[0])           # general path: exp/log on the EUP
    else:
        powed = _int_pow(xc, static_p)            # static integer p: pure VPU multiplies

    m = mask_ref[...]                             # (TB, TS), already raised to p
    acc_ref[...] += jnp.sum(powed * m[:, :, None], axis=1)

    @pl.when(s_idx == pl.num_programs(2) - 1)
    def _():
        inv_p = p_ref[1]
        o_ref[...] = jnp.power(acc_ref[...] * invden_ref[...], inv_p).astype(o_ref.dtype)


def _pick_tiles(B, S, H, itemsize):
    """Tile sizes honouring the (8,128) layout rules, preferring full-H DMA rows,
    and keeping >= 2 parallel grid steps for megacore chips."""
    # Layout rules:
    #   x block (tb, ts, th): ts % 8 == 0 or ts == S ; th % 128 == 0 or th == H
    #   mask block (tb, ts):  tb % 8 == 0 or tb == B ; ts % 128 == 0 or ts == S
    tb = 8 if (B > 8 and B % 8 == 0) else B

    # VMEM budget per x tile: double-buffered input + ~3 block-sized f32
    # intermediates (upcast, powed, masked) must stay well under the 32 MiB
    # scoped limit we request below.
    per_elem_bytes = 2 * itemsize + 3 * 4
    max_elems = (24 << 20) // per_elem_bytes

    ts_min = S if S <= 128 else 128

    # Hidden tile: prefer the full row (H is the contiguous HBM axis -> long
    # DMA bursts); otherwise the largest power-of-two multiple of 128 dividing
    # H that fits the budget at the minimal sequence tile.
    if H <= 128 or tb * ts_min * H <= max_elems:
        th = H
    else:
        th = H   # fallback: keep contiguous rows even if over budget
        cand, best = 128, 0
        while cand < H:
            if H % cand == 0 and tb * ts_min * cand <= max_elems:
                best = cand
            cand *= 2
        if best:
            th = best

    # Megacore: keep >= 2 steps on the parallel (b, h) axes.  Split B first
    # (preserves full-H contiguity and lane-dense stores); only shrink the
    # hidden tile when B cannot be split further.
    while (B // tb) * (H // th) < 2:
        if tb % 16 == 0:
            tb //= 2
        elif th % 256 == 0:
            th //= 2
        else:
            break

    # Sequence tile: shrink-first axis.  Grow in 128-multiples dividing S only
    # while the budget (with the final th) allows it.
    if S <= 128:
        ts = S
    else:
        ts, cand = 128, 256
        while cand <= S and S % cand == 0 and tb * cand * th <= max_elems:
            ts = cand
            cand *= 2

    return tb, ts, th


def gem_text_forward(x, attention_mask, p_param, *,
                     tile_b=None, tile_s=None, tile_h=None, cast_input_to=None):
    """x: (B, S, H) f32/bf16, attention_mask: (B, S), p_param: (1,) -> (B, H) f32."""
    if cast_input_to is not None:
        x = x.astype(cast_input_to)      # e.g. bf16: halves HBM bytes of the dominant stream
    B, S, H = x.shape
    itemsize = jnp.dtype(x.dtype).itemsize

    # ---- tile selection ------------------------------------------------------
    atb, ats, ath = _pick_tiles(B, S, H, itemsize)
    tile_b = atb if tile_b is None else tile_b
    tile_s = ats if tile_s is None else tile_s
    tile_h = ath if tile_h is None else tile_h

    assert B % tile_b == 0 and S % tile_s == 0 and H % tile_h == 0, (
        "GeMText Pallas kernel requires B/S/H divisible by the chosen tiles; "
        f"got B={B}, S={S}, H={H}, tiles=({tile_b}, {tile_s}, {tile_h})")
    # TODO(synk): padded-tail path for non-divisible shapes (zero-padding S is
    # mask-safe; a padded H tail would need masked stores).
    grid = (B // tile_b, H // tile_h, S // tile_s)

    # ---- static-p specialization ---------------------------------------------
    static_p = None
    try:
        pv = float(jax.device_get(p_param).reshape(-1)[0])
        if pv > 0 and abs(pv - round(pv)) < 1e-6 and round(pv) <= 16:
            static_p = int(round(pv))
    except Exception:
        static_p = None   # p is traced (e.g. under jit): fall back to exp/log path

    # ---- hoisted scalars / denominator / mask**p ------------------------------
    p = p_param.astype(jnp.float32).reshape(-1)[0]
    p_vec = jnp.stack([p, 1.0 / p])                                           # SMEM (2,)
    mask_f = attention_mask.astype(jnp.float32)                               # (B, S)
    inv_den = 1.0 / jnp.maximum(jnp.sum(mask_f, axis=1, keepdims=True), EPS)  # (B, 1)
    # (clamp(x,eps)*m)^p == clamp(x,eps)^p * m^p -> fold m^p into the mask once.
    # Exact for binary masks (m^p == m) and correct for soft masks too.
    mask_w = jnp.power(mask_f, p)                                             # (B, S)

    # ---- cost estimate (helps XLA overlap surrounding ops) --------------------
    n_elem = B * S * H
    cost = pl.CostEstimate(
        flops=(5 if static_p is not None else 3) * n_elem + 2 * B * H,
        transcendentals=(0 if static_p is not None else 2) * n_elem + 2 * B * H,
        bytes_accessed=n_elem * itemsize + B * S * 4 + B * H * 4 + B * 4,
    )

    return pl.pallas_call(
        functools.partial(gem_text_kernel, static_p=static_p),
        out_shape=jax.ShapeDtypeStruct((B, H), jnp.float32),
        grid_spec=pltpu.PrefetchScalarGridSpec(
            num_scalar_prefetch=0,
            grid=grid,
            in_specs=[
                pl.BlockSpec(memory_space=pltpu.SMEM),                               # [p, 1/p]
                pl.BlockSpec((tile_b, tile_s, tile_h), lambda b, h, s: (b, s, h)),   # x
                pl.BlockSpec((tile_b, tile_s), lambda b, h, s: (b, s)),              # mask**p
                pl.BlockSpec((tile_b, 1), lambda b, h, s: (b, 0)),                   # 1/den
            ],
            out_specs=pl.BlockSpec((tile_b, tile_h), lambda b, h, s: (b, h)),
            scratch_shapes=[pltpu.VMEM((tile_b, tile_h), jnp.float32)],
        ),
        compiler_params=pltpu.CompilerParams(
            dimension_semantics=("parallel", "parallel", "arbitrary"),
            vmem_limit_bytes=32 << 20,
        ),
        cost_estimate=cost,
    )(p_vec, x, mask_w, inv_den)


def gem_text_reference(x, attention_mask, p_param):
    """Pure-JAX mirror of the PyTorch forward."""
    p = p_param.reshape(-1)[0]
    mask_exp = jnp.broadcast_to(attention_mask[:, :, None].astype(x.dtype), x.shape)
    num = jnp.sum(jnp.power(jnp.maximum(x, EPS) * mask_exp, p), axis=1)
    den = jnp.maximum(jnp.sum(mask_exp, axis=1), EPS)
    return jnp.power(num / den, 1.0 / p)


if __name__ == "__main__":
    key = jax.random.PRNGKey(0)

    def make_mask(B, S, soft=False):
        # Deterministic mask with padding at the tail; optionally non-binary weights.
        lengths = jnp.minimum(jnp.maximum((jnp.arange(B, dtype=jnp.int32) % S) + S // 2, 1), S)
        m = (jnp.arange(S)[None, :] < lengths[:, None]).astype(jnp.float32)
        if soft:
            m = m * (0.25 + 0.75 * (jnp.arange(S, dtype=jnp.float32)[None, :] % 4) / 4.0)
        return m

    def run_check(B, S, H, p_value, subkey, soft_mask=False, **tiles):
        x = jax.random.normal(subkey, (B, S, H), dtype=jnp.float32)
        attention_mask = make_mask(B, S, soft=soft_mask)
        # Parameter init exactly as the module: p = ones(1) * p_value
        p_param = jnp.ones((1,), dtype=jnp.float32) * p_value
        # NOTE: the PyTorch forward also accepts input_ids / cfg but never uses them.

        out = jax.block_until_ready(gem_text_forward(x, attention_mask, p_param, **tiles))
        ref = gem_text_reference(x, attention_mask, p_param)
        assert out.shape == (B, H)
        assert jnp.allclose(out, ref, rtol=2e-4, atol=1e-5), \
            f"mismatch at B={B}, S={S}, H={H}, p={p_value}"

    k1, k2, k3 = jax.random.split(key, 3)
    # Small shape matching the module's (batch, seq, hidden) layout; p=3 hits the
    # static-integer (VPU-only) pow path.
    run_check(2, 8, 256, 3.0, k1)
    # Exercises hidden tiling, the megacore split, and the multi-step sequence
    # accumulator path (tile_s override forces 4 reduction steps).
    run_check(4, 1024, 512, 3.0, k2, tile_s=256)
    # Soft (non-binary) mask + fractional p -> general exp/log pow path and the
    # mask**p correctness path.
    run_check(2, 8, 256, 2.5, k3, soft_mask=True)

    print("KERNEL_OK")
</pallas_src>

<mosaic_0001>
module attributes {stable_mosaic.version = 11 : i64} {
  func.func @gem_text_kernel(%arg0: i32, %arg1: i32, %arg2: i32, %arg3: memref<2xf32, #tpu.memory_space<smem>>, %arg4: memref<2x8x128xf32, #tpu.memory_space<vmem>>, %arg5: memref<2x8xf32, #tpu.memory_space<vmem>>, %arg6: memref<2x1xf32, #tpu.memory_space<vmem>>, %arg7: memref<2x128xf32, #tpu.memory_space<vmem>>, %arg8: memref<2x128xf32, #tpu.memory_space<vmem>>) attributes {dimension_semantics = [#tpu.dimension_semantics<parallel>, #tpu.dimension_semantics<parallel>, #tpu.dimension_semantics<arbitrary>], iteration_bounds = array<i64: 1, 2, 1>, scalar_prefetch = 0 : i64, scratch_operands = 1 : i64, tpu.core_type = #tpu.core_type<tc>, window_params = [{transform_indices = @transform_0, window_bounds = array<i64: 2>}, {transform_indices = @transform_1, window_bounds = array<i64: 2, 8, 128>}, {transform_indices = @transform_2, window_bounds = array<i64: 2, 8>}, {transform_indices = @transform_3, window_bounds = array<i64: 2, 1>}, {transform_indices = @transform_4, window_bounds = array<i64: 2, 128>}]} {
    %c0_i32 = arith.constant 0 : i32
    %0 = arith.cmpi eq, %arg2, %c0_i32 : i32
    %1 = arith.extui %0 : i1 to i32
    %c0_i32_0 = arith.constant 0 : i32
    %2 = arith.cmpi ne, %1, %c0_i32_0 : i32
    scf.if %2 {
      %cst_12 = arith.constant 0.000000e+00 : f32
      %19 = vector.broadcast %cst_12 : f32 to vector<2x128xf32>
      %c0_13 = arith.constant 0 : index
      %c0_14 = arith.constant 0 : index
      %20 = vector.load %arg8[%c0_13, %c0_14] : memref<2x128xf32, #tpu.memory_space<vmem>>, vector<2x128xf32>
      tpu.vector_store %arg8[%c0_13, %c0_14], %19 {strides = array<i32>} : memref<2x128xf32, #tpu.memory_space<vmem>>, vector<2x128xf32>,
    } else {
    }
    %c0 = arith.constant 0 : index
    %c0_1 = arith.constant 0 : index
    %c0_2 = arith.constant 0 : index
    %3 = vector.load %arg4[%c0, %c0_1, %c0_2] : memref<2x8x128xf32, #tpu.memory_space<vmem>>, vector<2x8x128xf32>
    %cst = arith.constant 9.99999997E-7 : f32
    %4 = vector.broadcast %cst : f32 to vector<2x8x128xf32>
    %5 = arith.maximumf %3, %4 : vector<2x8x128xf32>
    %6 = arith.mulf %5, %5 : vector<2x8x128xf32>
    %7 = arith.mulf %5, %6 : vector<2x8x128xf32>
    %c0_3 = arith.constant 0 : index
    %c0_4 = arith.constant 0 : index
    %8 = vector.load %arg5[%c0_3, %c0_4] : memref<2x8xf32, #tpu.memory_space<vmem>>, vector<2x8xf32>
    %c0_5 = arith.constant 0 : index
    %c0_6 = arith.constant 0 : index
    %9 = vector.load %arg8[%c0_5, %c0_6] : memref<2x128xf32, #tpu.memory_space<vmem>>, vector<2x128xf32>
    %10 = vector.shape_cast %8 : vector<2x8xf32> to vector<2x8x1xf32>
    %11 = vector.broadcast %10 : vector<2x8x1xf32> to vector<2x8x128xf32>
    %12 = arith.mulf %7, %11 : vector<2x8x128xf32>
    %cst_7 = arith.constant dense<0.000000e+00> : vector<2x128xf32>
    %13 = vector.multi_reduction <add>, %12, %cst_7 [1] : vector<2x8x128xf32> to vector<2x128xf32>
    %14 = arith.addf %9, %13 : vector<2x128xf32>
    %c0_8 = arith.constant 0 : index
    %c0_9 = arith.constant 0 : index
    %15 = vector.load %arg8[%c0_8, %c0_9] : memref<2x128xf32, #tpu.memory_space<vmem>>, vector<2x128xf32>
    tpu.vector_store %arg8[%c0_8, %c0_9], %14 {strides = array<i32>} : memref<2x128xf32, #tpu.memory_space<vmem>>, vector<2x128xf32>,
    %c0_i32_10 = arith.constant 0 : i32
    %16 = arith.cmpi eq, %arg2, %c0_i32_10 : i32
    %17 = arith.extui %16 : i1 to i32
    %c0_i32_11 = arith.constant 0 : i32
    %18 = arith.cmpi ne, %17, %c0_i32_11 : i32
    scf.if %18 {
      %c1 = arith.constant 1 : index
      %19 = memref.load %arg3[%c1] : memref<2xf32, #tpu.memory_space<smem>>
      %c0_12 = arith.constant 0 : index
      %c0_13 = arith.constant 0 : index
      %20 = vector.load %arg8[%c0_12, %c0_13] : memref<2x128xf32, #tpu.memory_space<vmem>>, vector<2x128xf32>
      %c0_14 = arith.constant 0 : index
      %c0_15 = arith.constant 0 : index
      %21 = vector.load %arg6[%c0_14, %c0_15] : memref<2x1xf32, #tpu.memory_space<vmem>>, vector<2x1xf32>
      %22 = vector.broadcast %21 : vector<2x1xf32> to vector<2x128xf32>
      %23 = arith.mulf %20, %22 : vector<2x128xf32>
      %24 = vector.broadcast %19 : f32 to vector<2x128xf32>
      %25 = math.powf %23, %24 : vector<2x128xf32>
      %c0_16 = arith.constant 0 : index
      %c0_17 = arith.constant 0 : index
      %26 = vector.load %arg7[%c0_16, %c0_17] : memref<2x128xf32, #tpu.memory_space<vmem>>, vector<2x128xf32>
      tpu.vector_store %arg7[%c0_16, %c0_17], %25 {strides = array<i32>} : memref<2x128xf32, #tpu.memory_space<vmem>>, vector<2x128xf32>,
    } else {
    }
    return
  }
  func.func @transform_0(%arg0: i32, %arg1: i32, %arg2: i32) -> i32 {
    %c0_i32 = arith.constant 0 : i32
    %c0_i32_0 = arith.constant 0 : i32
    return %c0_i32 : i32
  }
  func.func @transform_1(%arg0: i32, %arg1: i32, %arg2: i32) -> (i32, i32, i32) {
    %c0_i32 = arith.constant 0 : i32
    return %arg0, %arg2, %arg1 : i32, i32, i32
  }
  func.func @transform_2(%arg0: i32, %arg1: i32, %arg2: i32) -> (i32, i32) {
    %c0_i32 = arith.constant 0 : i32
    return %arg0, %arg2 : i32, i32
  }
  func.func @transform_3(%arg0: i32, %arg1: i32, %arg2: i32) -> (i32, i32) {
    %c0_i32 = arith.constant 0 : i32
    %c0_i32_0 = arith.constant 0 : i32
    return %arg0, %c0_i32 : i32, i32
  }
  func.func @transform_4(%arg0: i32, %arg1: i32, %arg2: i32) -> (i32, i32) {
    %c0_i32 = arith.constant 0 : i32
    return %arg0, %arg1 : i32, i32
  }
}

</mosaic_0001>

<bundles_post_ra>
// kernel: tpu_custom_call.1
= control target key start
LH: loop header
LB: loop body
LE: loop exit
PB: predicated region body
PF: predicated region fallthrough
CT: control target
= control target key end

     0   :  { %9 = vsyncpa [#allocation6], 0  ;;  %s1098_s0 = inlined_call_operand.vmem [shape: f32[2], index: 0, kind: input, shape index: {}]   ;;  %s1099_s1 = inlined_call_operand.hbm [shape: f32[2,8,256], index: 1, kind: input, shape index: {}]   ;;  %s1100_s2 = inlined_call_operand.vmem [shape: f32[2,8], index: 2, kind: input, shape index: {}]   ;;  %s1101_s3 = inlined_call_operand.vmem [shape: f32[2,1], index: 3, kind: input, shape index: {}]   ;;  %s1102_s4 = inlined_call_operand.hbm [shape: f32[2,256], index: 4, kind: output, shape index: {}]  }
   0x1   :  { %10 = vsyncpa [#allocation4], 0 }
   0x2   :  { %12 = vsyncpa [#allocation4 + $0x1], 0 }
   0x3   :  { %13 = vsyncpa [#allocation5], 0 }
   0x4   :  { %15 = vsyncpa [#allocation5 + $0x1], 0  ;;  %s840_s15 = smov 0   ;;  %s842_s16 = smov 0  }
   0x5   :  { %s844_s17 = smov 0   ;;  %s846_s18 = smov 0  }
   0x6   :  { %s848_s19 = smov 0   ;;  %s850_s20 = smov 0  }
   0x7 LB: > { %s518_s21 = sadd.s32 4294967295, %s804_s20   ;;  %s519_s22 = sadd.s32 4294967294, %s804_s20   ;;  %s804_s20 = sphi %s850_s20, %s21_s20   ;;  %s800_s19 = sphi %s848_s19, %s1131_s19   ;;  %s796_s18 = sphi %s846_s18, %s1130_s18   ;;  %s792_s17 = sphi %s844_s17, %s1129_s17   ;;  %s788_s16 = sphi %s842_s16, %s1128_s16   ;;  %s784_s15 = sphi %s840_s15, %s1127_s15  }
   0x8   : > { %s72_s23 = sadd.s32 1, %s792_s17  ;;  %p79_p0 = scmp.ne.s32.totalorder %s792_s17, %s788_s16 }
   0x9   : > { %p80_p1 = scmp.eq.s32.totalorder %s804_s20, 0  ;;  %p85_p2 = scmp.ne.s32.totalorder %s788_s16, %s784_s15 }
   0xa   : > { %p878_p3 = scmp.eq.s32.totalorder %s518_s21, 0  ;;  %p165_p4 = scmp.eq.s32.totalorder %s518_s21, 1 }
   0xb   : > { %p882_p5 = por %p80_p1, %p79_p0  ;;  %p171_p6 = scmp.eq.s32.totalorder %s519_s22, 1 }
   0xc   : > { %s1107_s24 = scalar_select %p878_p3, 1, 0 }
   0xd   : > { %p888_p7 = por %p878_p3, %p85_p2  ;;  %p892_p8 = por %p165_p4, %p79_p0 }
   0xe   : > { %p896_p9 = por %p171_p6, %p85_p2  ;;  %p520_p10 = scmp.ge.s32.totalorder %s804_s20, 1 }
   0xf   : > { %s1109_s26 = scalar_select %p888_p7, 1, 0 }
  0x10   : > { %s1110_s27 = scalar_select %p892_p8, 1, 0 }
  0x11   : > { %s1111_s28 = scalar_select %p896_p9, 1, 0 }
  0x12   : > { %p178_p11 = scmp.lt.s32.totalorder %s804_s20, 3  ;;  %s191_s5 = sshll.u32 %s1098_s0, 4  ;;  %s192_s5 = int_to_ptr.vmem [resolvable:$true] %s191_s5 }
  0x13   : > { %p609_p0 = scmp.lt.s32.totalorder %s804_s20, 2  ;;  %s36_s9 = sadd.s32 1, %s800_s19 }
  0x14   : > { %p905_p12 = pnand %p520_p10, %p178_p11  ;;  %p926_p6 = scmp.ge.s32.totalorder %s36_s9, 2 }
  0x15   : > { %p915_p2 = pnand %p609_p0, %p882_p5  ;;  %s219_s11 = sand.u32 1, %s792_s17  }
  0x16   : > { %p596_p1 = pneg %p905_p12  ;;  %s673_s12 = scalar_lea.vmem %s192_s5, 16 }
  0x17   : > { %p674_p10 = scmp.ne.s32.totalorder %s192_s5, %s673_s12  ;;  %p681_p13 = scmp.lt.s32.totalorder %s192_s5, %s192_s5 }
  0x18   : > { %p921_p4 = pnand %p596_p1, %p878_p3  ;;  %p682_p9 = scmp.lt.s32.totalorder %s673_s12, %s673_s12 }
  0x1a   : > { %p675_p11 = pneg %p921_p4  ;;  %p683_p8 = por %p682_p9, %p681_p13 }
  0x1c   : > { %p676_p5 = pnand %p675_p11, %p674_p10 }
  0x1e   : > { %p677_p0 = pneg %p676_p5 }
  0x20   : > { %p684_p1 = pnand %p683_p8, %p677_p0 }
  0x22   : > { %687 = shalt.err (!%p684_p1)
}
  0x23   : > { %s806_s13 = smov [#allocation3]   ;;  %s1133_s9 = smov (%p926_p6, %s36_s9), 0 }
  0x24   : > { %599 = dma.vmem_to_smem (!%p921_p4), %s192_s5, 16, %s806_s13, [#allocation6]  }
  0x25   : > { %s525_s14 = sshll.u32 %s219_s11, 4  ;;  %s68_s21 = ssub.s32 %s800_s19, %s1133_s9 }
  0x26   : > { %p70_p9 = scmp.eq.s32.totalorder %s68_s21, 0  ;;  %s526_s22 = sshll.u32 %s800_s19, 7 }
  0x27   : > { %s945_s30 = scalar_lea.hbm %s1099_s1, %s526_s22  ;;  %s223_s8 = scalar_lea.vmem [#allocation7], %s525_s14 }
  0x28   : > { %s234_s12 = sshll.u32 %s223_s8, 4  ;;  %s954_s10 = scalar_lea.sflag [#allocation4], %s219_s11  ;;  %s952_s12 = int_to_ptr.vmem [resolvable:$true] %s234_s12 }
  0x29   : > { %s950_s5 = scalar_select %p70_p9, %s792_s17, %s72_s23  }
  0x2a   : > { %s688_s13 = scalar_lea.hbm %s945_s30, 256  ;;  %p690_p13 = pneg %p915_p2 }
  0x2b   : > { %p689_p8 = scmp.ne.s32.totalorder %s945_s30, %s688_s13  ;;  %s693_s14 = scalar_lea.hbm %s1099_s1, 512 }
  0x2c   : > { %p694_p10 = scmp.lt.u32.totalorder %s945_s30, %s1099_s1  ;;  %p695_p11 = scmp.lt.u32.totalorder %s693_s14, %s688_s13 }
  0x2d   : > { %p691_p4 = pnand %p690_p13, %p689_p8  ;;  %p697_p0 = scmp.lt.u32.totalorder %s688_s13, %s945_s30 }
  0x2e   : > { %p696_p5 = por %p695_p11, %p694_p10 }
  0x2f   : > { %p692_p6 = pneg %p691_p4 }
  0x30   : > { %p698_p1 = por %p697_p0, %p696_p5 }
  0x32   : > { %p699_p9 = pnand %p698_p1, %p692_p6 }
  0x34   : > { %702 = shalt.err (!%p699_p9)
}
  0x35   : > { %s703_s23 = scalar_lea.vmem %s952_s12, 256  ;;  %s807_s11 = smov [#allocation7]  }
  0x36   : > { %p704_p8 = scmp.ne.s32.totalorder %s952_s12, %s703_s23  ;;  %s708_s8 = sshll.u32 %s807_s11, 4  ;;  %s709_s8 = int_to_ptr.vmem [resolvable:$false] %s708_s8 }
  0x37   : > { %s710_s21 = scalar_lea.vmem %s709_s8, 512  ;;  %p711_p3 = scmp.lt.s32.totalorder %s952_s12, %s709_s8 }
  0x38   : > { %p706_p4 = pnand %p704_p8, %p690_p13  ;;  %p712_p10 = scmp.lt.s32.totalorder %s710_s21, %s703_s23 }
  0x3a   : > { %p707_p7 = pneg %p706_p4  ;;  %p713_p11 = por %p712_p10, %p711_p3 }
  0x3c   : > { %p714_p5 = pnand %p713_p11, %p707_p7 }
  0x3e   : > { %717 = shalt.err (!%p714_p5)
}
  0x3f   : > { %s808_s13 = smov 256   ;;  %s809_s22 = smov 128  }
  0x40   : > { %s810_s14 = smov 8   ;;  %246 = sbr.rel (%p905_p12) target bundleno = 282 (0x11a), region = 36 }
  0x41   : > { %603 = dma.hbm_to_vmem [thread:$0]  (!%p915_p2), %s945_s30, 256, %s952_s12, %s954_s10, %s808_s13, %s809_s22, %s810_s14  }
  0x42   : > { %p1116_p13 = scmp.ne.s32.totalorder (!%p905_p12), %s1107_s24, 0 }
  0x47   : > { %771 = dma.done.wait (%p1116_p13), [#allocation6], 16  }
  0x48   : > { %773 = vsyncadd (%p1116_p13), [#allocation6], 4294967280  ;;  %s989_s25 = sand.u32 1, %s788_s16   ;;  %p1117_p3 = scmp.ne.s32.totalorder %s1109_s26, 0 }
  0x49   : > { %s529_s29 = sshll.u32 %s989_s25, 4  ;;  %s253_s23 = scalar_lea.sflag [#allocation4], %s989_s25 }
  0x4a   : > { %s256_s11 = scalar_lea.vmem [#allocation7], %s529_s29 }
  0x4b   : > { %775 = dma.done.wait (%p1117_p3), %s253_s23, 256  }
  0x4c   : > { %777 = vsyncadd (%p1117_p3), %s253_s23, 4294967040 }
  0x4d   : > { %261 = sfence }
  0x4e   : > { %v320_v0 = vlaneseq  ;;  %v811_v1 = vmov 0   ;;  %v360_v2 = vld [vmem:[%s1101_s3] sm:$0x3]  ;;  %v812_v8 = vmov 0.0   ;;  %v310_v10 = vld [vmem:[%s256_s11] sm:$0xff]  ;;  %vm350_vm0 = vcmask 1041409  }
  0x4f   : > { %667 = vset.pattern.permute.xlu1 %v811_v1  ;;  %668 = vset.pattern.permute.xlu0 %v811_v1  ;;  %v318_v4 = vld [vmem:[%s1100_s2] sm:$0x3]  ;;  %309 = vst [vmem:[#allocation2] sm:$0x3] %v812_v8  ;;  %v312_v11 = vmax.f32 %v310_v10, 1e-06 }
  0x50   : > { %v321_v3 = vshrl.u32 %v320_v0, 7  ;;  %363 = vperm.xlu1 %667, %v360_v2   ;;  %v311_v12 = vld [vmem:[%s256_s11 + $0x8] sm:$0xff]  ;;  %s531_s26 = sld [smem:[#allocation3 + $0x1]]  ;;  %v813_v51 = vmov 2139095040   ;;  %s530_s12 = sshll.u32 %s989_s25, 1 }
  0x51   : > { %v314_v13 = vmul.f32 %v312_v11, %v312_v11  ;;  %v313_v14 = vmax.f32 %v311_v12, 1e-06  ;;  %s533_s10 = sshll.u32 %s796_s18, 5  ;;  %s292_s8 = scalar_lea.vmem [#allocation8], %s530_s12 }
  0x52   : > { %v322_v5 = vsub.s32 0, %v321_v3  ;;  %v329_v6 = vsub.s32 1, %v321_v3  ;;  %s386_s21 = sshll.u32 %s292_s8, 4  ;;  %s1049_s14 = scalar_lea.hbm %s1102_s4, %s533_s10  ;;  %s1051_s21 = int_to_ptr.vmem [resolvable:$true] %s386_s21 }
  0x53   : > { %v316_v15 = vmul.f32 %v314_v13, %v312_v11  ;;  %v315_v16 = vmul.f32 %v313_v14, %v313_v14  ;;  %s371_s18 = scalar_lea.sflag [#allocation5], %s989_s25  ;;  %s718_s29 = scalar_lea.vmem %s1051_s21, 32 }
  0x54   : > { %v323_v7 = vrot.slane %v318_v4, %v322_v5  ;;  %v330_v9 = vrot.slane %v318_v4, %v329_v6  ;;  %p719_p7 = scmp.ne.s32.totalorder %s1051_s21, %s718_s29  ;;  %p1124_p12 = scmp.ne.s32.totalorder %s1110_s27, 0 }
  0x55   : > { %v317_v19 = vmul.f32 %v315_v16, %v313_v14  ;;  %s814_s23 = smov [#allocation8]  }
  0x56   : > { %325 = vbcast.lane.b32.xlu0 %v323_v7, 256  ;;  %v319_v33 = vld [vmem:[#allocation2] sm:$0x3]  ;;  %v1005_v38 = vstv %s531_s26  ;;  %p720_p2 = pnand %p719_p7, %p1124_p12  ;;  %s722_s11 = sshll.u32 %s814_s23, 4  ;;  %s723_s11 = int_to_ptr.vmem [resolvable:$false] %s722_s11 }
  0x57   : > { %v540_v42 = vand.u32 2147483647, %v1005_v38  ;;  %v545_v44 = vtrunc.f32 %v1005_v38  ;;  %vm544_vm6 = vcmp.lt.f32.partialorder %v1005_v38, 0  ;;  %s724_s24 = scalar_lea.vmem %s723_s11, 64  ;;  %p725_p0 = scmp.lt.s32.totalorder %s1051_s21, %s723_s11 }
  0x58   : > { %v576_v52 = vsel %vm544_vm6, 0, %v813_v51  ;;  %v564_v54 = vsel %vm544_vm6, 2139095040, %v811_v1  ;;  %p721_p6 = pneg %p720_p2  ;;  %p726_p1 = scmp.lt.s32.totalorder %s724_s24, %s718_s29 }
  0x59   : > { %v549_v43 = vtrunc.f32 %v540_v42  ;;  %vm541_vm1 = vcmp.eq.f32.partialorder %v540_v42, 2139095040  ;;  %vm546_vm2 = vcmp.ne.f32.partialorder %v1005_v38, %v545_v44  ;;  %vm548_vm8 = vcmp.lt.f32.partialorder %v540_v42, 1266679808 }
  0x5a   : > { %332 = vbcast.lane.b32.xlu0 %v330_v9, 256  ;;  %vm1012_vm3 = vmor %vm546_vm2, %vm541_vm1  ;;  %v577_v55 = vxor.u32 2147483648, %v576_v52  ;;  %p727_p9 = por %p726_p1, %p725_p0 }
  0x5b   : > { %v550_v45 = vcvt.f32.s32 %v549_v43  ;;  %vm553_vm5 = vmneg %vm1012_vm3 }
  0x5c   : > { %p728_p8 = pnand %p727_p9, %p721_p6 }
  0x5d   : > { %v551_v47 = vand.u32 1, %v550_v45 }
  0x5f   : > { %vm552_vm4 = vcmp.eq.s32.totalorder %v551_v47, 1 }
  0x60   : > { %vm554_vm9 = vmand %vm552_vm4, %vm553_vm5 }
  0x61   : > { %vm1023_vm12 = vmand %vm548_vm8, %vm554_vm9 }
  0x62   : > { %v578_v61 = vsel %vm1023_vm12, %v577_v55, %v576_v52 }
  0xc8   : > { %v326_v17 = vpop.permute.xlu0 %325 }
  0xc9   : > { %v334_v18 = vmul.f32 %v326_v17, %v316_v15 }
  0xcb   : > { %v336_v20 = vrot.slane %v334_v18, 4 }
  0xcc   : > { %v333_v21 = vpop.permute.xlu0 %332 }
  0xcd   : > { %v337_v22 = vadd.f32 %v336_v20, %v334_v18  ;;  %v335_v23 = vmul.f32 %v333_v21, %v317_v19 }
  0xcf   : > { %v338_v24 = vrot.slane %v337_v22, 2  ;;  %v342_v25 = vrot.slane %v335_v23, 4  ;;  %v364_v37 = vpop.permute.xlu1 %363 }
  0xd1   : > { %v339_v26 = vadd.f32 %v338_v24, %v337_v22  ;;  %v343_v27 = vadd.f32 %v342_v25, %v335_v23 }
  0xd3   : > { %v344_v28 = vrot.slane %v343_v27, 2  ;;  %v340_v29 = vrot.slane %v339_v26, 1 }
  0xd5   : > { %v345_v30 = vadd.f32 %v344_v28, %v343_v27  ;;  %v341_v32 = vadd.f32 %v340_v29, %v339_v26 }
  0xd7   : > { %v346_v31 = vrot.slane %v345_v30, 1 }
  0xd9   : > { %v347_v34 = vadd.f32 %v346_v31, %v345_v30 }
  0xdb   : > { %v351_v35 = vsel %vm350_vm0, %v347_v34, %v341_v32 }
  0xdc   : > { %v353_v36 = vadd.f32 %v351_v35, %v319_v33 }
  0xde   : > { %354 = vst [vmem:[#allocation2] sm:$0x3] %v353_v36 }
  0xe5   : > { %v359_v39 = vld [vmem:[#allocation2] sm:$0x3] }
  0xe6   : > { %v366_v40 = vmul.f32 %v364_v37, %v359_v39 }
  0xe8   : > { %v536_v41 = vand.u32 2147483647, %v366_v40  ;;  %vm557_vm10 = vcmp.eq.f32.partialorder %v366_v40, 0  ;;  %vm556_vm13 = vcmp.lt.f32.partialorder %v366_v40, 0  ;;  %vm559_vm2 = vcmp.lt.s32.totalorder %v366_v40, 0 }
  0xe9   : > { %vm569_vm14 = vmand %vm544_vm6, %vm557_vm10  ;;  %vm573_vm5 = vcmp.eq.f32.partialorder %v366_v40, 3212836864  ;;  %vm558_vm8 = vcmp.eq.f32.partialorder %v366_v40, 1065353216 }
  0xea   : > { %669 = vlog2.f32 %v536_v41  ;;  %vm560_vm7 = vcmp.gt.f32.partialorder %v536_v41, 1065353216  ;;  %vm562_vm0 = vmand %vm556_vm13, %vm1012_vm3  ;;  %vm542_vm3 = vcmp.eq.f32.partialorder %v1005_v38, 0  ;;  %vm561_vm9 = vcmp.eq.f32.partialorder %v536_v41, 2139095040 }
  0xeb   : > { %vm1019_vm11 = vmxor %vm544_vm6, %vm560_vm7  ;;  %vm581_vm6 = vcmp.ne.f32.partialorder %v366_v40, %v366_v40  ;;  %vm582_vm7 = vcmp.ne.f32.partialorder %v1005_v38, %v1005_v38 }
  0xec   : > { %vm571_vm15 = vmor %vm569_vm14, %vm1019_vm11 }
  0xed   : > { %v572_v59 = vsel %vm571_vm15, 2139095040, %v811_v1  ;;  %vm566_vm4 = vmand %vm559_vm2, %vm1023_vm12  ;;  %v579_v1 = vsel %vm556_vm13, %v578_v61, %v576_v52 }
  0xee   : > { %v574_v63 = vsel %vm573_vm5, 1065353216, %v572_v59  ;;  %vm583_vm11 = vmor %vm581_vm6, %vm582_vm7 }
  0xef   : > { %vm585_vm12 = vmor %vm558_vm8, %vm542_vm3 }
  0xf4   : > { %v670_v46 = vpop.eup %669 }
  0xf5   : > { %v538_v48 = vmul.f32 %v670_v46, %v1005_v38 }
  0xf7   : > { %671 = vpow2.f32 %v538_v48 }
 0x101   : > { %v672_v56 = vpop.eup %671 }
 0x102   : > { %v563_v57 = vsel %vm562_vm0, 2143289344, %v672_v56 }
 0x103   : > { %v565_v58 = vsel %vm557_vm10, %v564_v54, %v563_v57  ;;  %vm543_vm10 = vcmp.eq.f32.partialorder %v1005_v38, 1065353216 }
 0x104   : > { %v567_v60 = vxor.u32 2147483648, %v565_v58 }
 0x106   : > { %v568_v62 = vsel %vm566_vm4, %v567_v60, %v565_v58 }
 0x107   : > { %v575_v0 = vsel %vm541_vm1, %v574_v63, %v568_v62 }
 0x108   : > { %v580_v2 = vsel %vm561_vm9, %v579_v1, %v575_v0 }
 0x109   : > { %v584_v3 = vsel %vm583_vm11, 2143289344, %v580_v2 }
 0x10a   : > { %v586_v4 = vsel %vm585_vm12, 1065353216, %v584_v3 }
 0x10b   : > { %v587_v5 = vsel %vm543_vm10, %v366_v40, %v586_v4 }
 0x10c   : > { %369 = vst [vmem:[%s292_s8] sm:$0x3] %v587_v5 }
 0x10d   : > { %731 = shalt.err (!%p728_p8)
}
 0x10e   : > { %s732_s25 = scalar_lea.hbm %s1049_s14, 32  ;;  %s736_s30 = scalar_lea.hbm %s1102_s4, 64 }
 0x10f   : > { %p733_p4 = scmp.ne.s32.totalorder %s1049_s14, %s732_s25  ;;  %p737_p5 = scmp.lt.u32.totalorder %s1049_s14, %s1102_s4 }
 0x110   : > { %p738_p13 = scmp.lt.u32.totalorder %s736_s30, %s732_s25  ;;  %p740_p7 = scmp.lt.u32.totalorder %s732_s25, %s1049_s14 }
 0x111   : > { %p734_p10 = pnand %p733_p4, %p1124_p12 }
 0x112   : > { %p739_p3 = por %p738_p13, %p737_p5 }
 0x113   : > { %p735_p11 = pneg %p734_p10 }
 0x114   : > { %p741_p2 = por %p740_p7, %p739_p3 }
 0x116   : > { %p742_p6 = pnand %p741_p2, %p735_p11 }
 0x118   : > { %745 = shalt.err (!%p742_p6)
}
 0x119   : > { %594 = dma.vmem_to_hbm [thread:$0]  (%p1124_p12), %s1051_s21, 32, %s1049_s14, %s371_s18  }
 0x11a PF: > { %s398_s10 = sand.u32 1, %s784_s15   ;;  %p1125_p0 = scmp.ne.s32.totalorder %s1111_s28, 0 }
 0x11b   : > { %p1126_p1 = scmp.ge.s32.totalorder %s804_s20, 2  ;;  %s399_s8 = scalar_lea.sflag [#allocation5], %s398_s10 }
 0x11d   : > { %p605_p9 = pnand %p1126_p1, %p1125_p0 }
 0x11f   : > { %779 = dma.done.wait (!%p605_p9), %s399_s8, 32  }
 0x120   : > { %781 = vsyncadd (!%p605_p9), %s399_s8, 4294967264  ;;  %s21_s20 = sadd.s32 1, %s804_s20   ;;  %s1127_s15 = smov %s788_s16 }
 0x121   : > { %p18_p8 = scmp.ge.s32.totalorder %s21_s20, 4   ;;  %s1128_s16 = smov %s792_s17 }
 0x122   : > { %s1129_s17 = smov %s950_s5  ;;  %s1130_s18 = smov %s800_s19 }
 0x123   : > { %s1131_s19 = smov %s1133_s9  ;;  %20 = sbr.rel (!%p18_p8) target bundleno = 7 (0x7), region = 100 }
 0x12a   :  { %404 = vsyncpa [#allocation4], 1 }
 0x12b   :  { %406 = vsyncpa [#allocation4 + $0x1], 1 }
 0x12c   :  { %407 = vsyncpa [#allocation5], 1 }
 0x12d   :  { %409 = vsyncpa [#allocation5 + $0x1], 1 }
 0x12e   :  { %410 = vsyncpa [#allocation6], 1 }
 0x12f   :  { %412 = vsyncpa [#allocation6 + $0x1], 1 }

</bundles_post_ra>
